<compile_context>
chip_gen: v6e
topology: v6e:2x2x1
jax: 0.10.0
libtpu: 0.0.40
codegen_flags: <defaults>
</compile_context>

<pallas_src>
import jax
import jax.numpy as jnp
from jax import lax
from jax.experimental import pallas as pl
from jax.experimental.pallas import tpu as pltpu


def _round_up(x, m):
    return (x + m - 1) // m * m


def _head_kernel(h1_ref, h2_ref, h3_ref, h4_ref,
                 w11_ref, b11_ref, w12_ref, b12_ref,
                 w13_ref, b13_ref, w14_ref, b14_ref,
                 w2a_ref, w2b_ref, w2c_ref, w2d_ref, b2_ref,
                 w3t_ref, b3_ref,
                 out_ref):
    cd = w11_ref.dtype  # MXU operand dtype (bf16 by default, f32 optional)

    def proj_relu(h_ref, w_ref, b_ref):
        # fc1_i + ReLU (dropout == identity). f32 accumulation on the MXU.
        y = jnp.dot(h_ref[...], w_ref[...], preferred_element_type=jnp.float32)
        return jnp.maximum(y + b_ref[...], 0.0)      # f32 [tile_m, H//4]

    f1 = proj_relu(h1_ref, w11_ref, b11_ref)   # last hidden state
    f2 = proj_relu(h2_ref, w12_ref, b12_ref)   # second-to-last
    f3 = proj_relu(h3_ref, w13_ref, b13_ref)   # third-to-last
    f4 = proj_relu(h4_ref, w14_ref, b14_ref)   # fourth-to-last

    # fc2: instead of concat([f1..f4], lanes) @ w2 (a lane concat of H/4-wide
    # pieces forces XLU relayouts each step), accumulate four K=H/4 matmuls
    # into the same f32 result — mathematically identical.
    g = (jnp.dot(f1.astype(cd), w2a_ref[...], preferred_element_type=jnp.float32)
         + jnp.dot(f2.astype(cd), w2b_ref[...], preferred_element_type=jnp.float32)
         + jnp.dot(f3.astype(cd), w2c_ref[...], preferred_element_type=jnp.float32)
         + jnp.dot(f4.astype(cd), w2d_ref[...], preferred_element_type=jnp.float32))
    g = jnp.maximum(g + b2_ref[...], 0.0)            # f32 [tile_m, 128]

    # fc3 as a transposed GEMV producing a lane-dense (1, tile_m) output row:
    #   out[0, m] = sum_k w3[k, 0] * g[m, k]
    # w3t_ref is (8, 128): row 0 = w3^T, rows 1..7 zero (M padded to a full
    # sublane so the matmul shape is MXU-friendly).
    out_full = lax.dot_general(
        w3t_ref[...], g.astype(cd),
        dimension_numbers=(((1,), (1,)), ((), ())),
        preferred_element_type=jnp.float32)          # [8, tile_m]
    out_ref[...] = (out_full[0:1, :] + b3_ref[...]).astype(out_ref.dtype)


def deberta_last_four_head(hidden_states, params, *, tile_m=512,
                           compute_dtype=jnp.bfloat16,
                           vmem_limit_bytes=45 * 1024 * 1024):
    """hidden_states: tuple of 4 arrays [B, S, H] ordered (last, -2, -3, -4)."""
    h_last, h_m2, h_m3, h_m4 = hidden_states
    B, S, H = h_last.shape
    H4 = H // 4
    N = B * S

    # Tile sizing: clamp for small inputs so we don't over-pad; 16-row
    # granularity keeps sublane blocking legal for both f32 and bf16.
    tile_m = max(16, min(_round_up(tile_m, 16), _round_up(N, 16)))
    n_pad = _round_up(N, tile_m)
    num_tiles = n_pad // tile_m

    def prep_hidden(h):
        x = h.reshape(N, H).astype(compute_dtype)
        if n_pad != N:
            x = jnp.pad(x, ((0, n_pad - N), (0, 0)))   # ragged tail -> zero pad
        return x

    flat = [prep_hidden(h) for h in (h_last, h_m2, h_m3, h_m4)]

    (w11, b11), (w12, b12), (w13, b13), (w14, b14), (w2, b2), (w3, b3) = params
    cd = compute_dtype
    w11c, w12c, w13c, w14c = (w.astype(cd) for w in (w11, w12, w13, w14))
    # Split fc2 weight into the four per-hidden-state K chunks (replaces concat).
    w2a, w2b, w2c_, w2d = (w2[i * H4:(i + 1) * H4].astype(cd) for i in range(4))
    # fc3 weight transposed and padded to 8 sublanes for the transposed GEMV.
    w3t = jnp.zeros((8, w3.shape[0]), cd).at[0].set(w3[:, 0].astype(cd))
    b3r = b3.reshape(1, 1).astype(jnp.float32)

    row_spec = pl.BlockSpec((tile_m, H), lambda i: (i, 0))

    def full(a):
        return pl.BlockSpec(a.shape, lambda i: (0, 0))

    out_spec = pl.BlockSpec((1, tile_m), lambda i: (i, 0))

    kernel = pl.pallas_call(
        _head_kernel,
        out_shape=jax.ShapeDtypeStruct((num_tiles, tile_m), jnp.float32),
        grid_spec=pltpu.PrefetchScalarGridSpec(
            num_scalar_prefetch=0,
            grid=(num_tiles,),
            in_specs=[row_spec, row_spec, row_spec, row_spec,
                      full(w11c), full(b11), full(w12c), full(b12),
                      full(w13c), full(b13), full(w14c), full(b14),
                      full(w2a), full(w2b), full(w2c_), full(w2d), full(b2),
                      full(w3t), full(b3r)],
            out_specs=out_spec,
        ),
        compiler_params=pltpu.CompilerParams(
            dimension_semantics=("parallel",),
            vmem_limit_bytes=vmem_limit_bytes),
    )

    out = kernel(*flat,
                 w11c, b11, w12c, b12, w13c, b13, w14c, b14,
                 w2a, w2b, w2c_, w2d, b2,
                 w3t, b3r)
    return out.reshape(n_pad, 1)[:N].reshape(B, S, 1)


def make_params(key, hidden_size, initializer_range=0.02):
    """Deterministic init matching _init_weights: N(0, initializer_range), bias=0."""
    H = hidden_size
    H4 = H // 4
    keys = jax.random.split(key, 6)

    def linear(k, fan_in, fan_out):
        w = initializer_range * jax.random.normal(k, (fan_in, fan_out), jnp.float32)
        b = jnp.zeros((1, fan_out), jnp.float32)
        return w, b

    p11 = linear(keys[0], H, H4)
    p12 = linear(keys[1], H, H4)
    p13 = linear(keys[2], H, H4)
    p14 = linear(keys[3], H, H4)
    p2 = linear(keys[4], H4 * 4, 128)
    p3 = linear(keys[5], 128, 1)
    return (p11, p12, p13, p14, p2, p3)


def reference_head(hidden_states, params, compute_dtype=jnp.float32):
    """Pure-JAX reference; casts MXU operands to compute_dtype like the kernel."""
    (w11, b11), (w12, b12), (w13, b13), (w14, b14), (w2, b2), (w3, b3) = params
    cd = compute_dtype
    relu = lambda x: jnp.maximum(x, 0.0)

    def lin(x, w, b):
        return jnp.dot(x.astype(cd), w.astype(cd),
                       preferred_element_type=jnp.float32) + b

    h1, h2, h3, h4 = hidden_states
    f = jnp.concatenate(
        [relu(lin(h1, w11, b11)), relu(lin(h2, w12, b12)),
         relu(lin(h3, w13, b13)), relu(lin(h4, w14, b14))], axis=-1)
    g = relu(lin(f, w2, b2))
    return lin(g, w3, b3)


if __name__ == "__main__":
    B, S, H = 2, 8, 32  # small synthetic shapes: batch=2, seq=8, hidden=32

    key = jax.random.PRNGKey(0)
    k_h, k_p = jax.random.split(key)
    hk = jax.random.split(k_h, 4)
    hidden_states = tuple(
        jax.random.normal(hk[i], (B, S, H), jnp.float32) for i in range(4))

    params = make_params(k_p, H)

    # f32 MXU-operand path: tight check against the pure-f32 reference.
    out_f32 = jax.block_until_ready(
        deberta_last_four_head(hidden_states, params,
                               compute_dtype=jnp.float32))
    ref_f32 = reference_head(hidden_states, params, compute_dtype=jnp.float32)
    assert out_f32.shape == (B, S, 1)
    assert jnp.allclose(out_f32, ref_f32, atol=1e-5, rtol=1e-5), "f32 mismatch"

    # bf16 MXU-operand path (performance default on v6e/v7x): check against a
    # reference applying the same operand casts (f32 accumulation in both).
    out_bf16 = jax.block_until_ready(
        deberta_last_four_head(hidden_states, params))
    ref_bf16 = reference_head(hidden_states, params, compute_dtype=jnp.bfloat16)
    assert out_bf16.shape == (B, S, 1)
    assert jnp.allclose(out_bf16, ref_bf16, atol=1e-4, rtol=1e-2), "bf16 mismatch"

    print("KERNEL_OK")
</pallas_src>

<mosaic_0001>
module attributes {stable_mosaic.version = 11 : i64} {
  func.func @_head_kernel(%arg0: i32, %arg1: memref<16x32xf32, #tpu.memory_space<vmem>>, %arg2: memref<16x32xf32, #tpu.memory_space<vmem>>, %arg3: memref<16x32xf32, #tpu.memory_space<vmem>>, %arg4: memref<16x32xf32, #tpu.memory_space<vmem>>, %arg5: memref<32x8xf32, #tpu.memory_space<vmem>>, %arg6: memref<1x8xf32, #tpu.memory_space<vmem>>, %arg7: memref<32x8xf32, #tpu.memory_space<vmem>>, %arg8: memref<1x8xf32, #tpu.memory_space<vmem>>, %arg9: memref<32x8xf32, #tpu.memory_space<vmem>>, %arg10: memref<1x8xf32, #tpu.memory_space<vmem>>, %arg11: memref<32x8xf32, #tpu.memory_space<vmem>>, %arg12: memref<1x8xf32, #tpu.memory_space<vmem>>, %arg13: memref<8x128xf32, #tpu.memory_space<vmem>>, %arg14: memref<8x128xf32, #tpu.memory_space<vmem>>, %arg15: memref<8x128xf32, #tpu.memory_space<vmem>>, %arg16: memref<8x128xf32, #tpu.memory_space<vmem>>, %arg17: memref<1x128xf32, #tpu.memory_space<vmem>>, %arg18: memref<8x128xf32, #tpu.memory_space<vmem>>, %arg19: memref<1x1xf32, #tpu.memory_space<vmem>>, %arg20: memref<1x16xf32, #tpu.memory_space<vmem>>) attributes {dimension_semantics = [#tpu.dimension_semantics<parallel>], iteration_bounds = array<i64: 1>, scalar_prefetch = 0 : i64, scratch_operands = 0 : i64, tpu.core_type = #tpu.core_type<tc>, window_params = [{transform_indices = @transform_0, window_bounds = array<i64: 16, 32>}, {transform_indices = @transform_1, window_bounds = array<i64: 16, 32>}, {transform_indices = @transform_2, window_bounds = array<i64: 16, 32>}, {transform_indices = @transform_3, window_bounds = array<i64: 16, 32>}, {pipeline_mode = #tpu.pipeline_mode<synchronous>, transform_indices = @transform_4, window_bounds = array<i64: 32, 8>}, {pipeline_mode = #tpu.pipeline_mode<synchronous>, transform_indices = @transform_5, window_bounds = array<i64: 1, 8>}, {pipeline_mode = #tpu.pipeline_mode<synchronous>, transform_indices = @transform_6, window_bounds = array<i64: 32, 8>}, {pipeline_mode = #tpu.pipeline_mode<synchronous>, transform_indices = @transform_7, window_bounds = array<i64: 1, 8>}, {pipeline_mode = #tpu.pipeline_mode<synchronous>, transform_indices = @transform_8, window_bounds = array<i64: 32, 8>}, {pipeline_mode = #tpu.pipeline_mode<synchronous>, transform_indices = @transform_9, window_bounds = array<i64: 1, 8>}, {pipeline_mode = #tpu.pipeline_mode<synchronous>, transform_indices = @transform_10, window_bounds = array<i64: 32, 8>}, {pipeline_mode = #tpu.pipeline_mode<synchronous>, transform_indices = @transform_11, window_bounds = array<i64: 1, 8>}, {pipeline_mode = #tpu.pipeline_mode<synchronous>, transform_indices = @transform_12, window_bounds = array<i64: 8, 128>}, {pipeline_mode = #tpu.pipeline_mode<synchronous>, transform_indices = @transform_13, window_bounds = array<i64: 8, 128>}, {pipeline_mode = #tpu.pipeline_mode<synchronous>, transform_indices = @transform_14, window_bounds = array<i64: 8, 128>}, {pipeline_mode = #tpu.pipeline_mode<synchronous>, transform_indices = @transform_15, window_bounds = array<i64: 8, 128>}, {pipeline_mode = #tpu.pipeline_mode<synchronous>, transform_indices = @transform_16, window_bounds = array<i64: 1, 128>}, {pipeline_mode = #tpu.pipeline_mode<synchronous>, transform_indices = @transform_17, window_bounds = array<i64: 8, 128>}, {pipeline_mode = #tpu.pipeline_mode<synchronous>, transform_indices = @transform_18, window_bounds = array<i64: 1, 1>}, {transform_indices = @transform_19, window_bounds = array<i64: 1, 16>}]} {
    %c0 = arith.constant 0 : index
    %c0_0 = arith.constant 0 : index
    %0 = vector.load %arg1[%c0, %c0_0] : memref<16x32xf32, #tpu.memory_space<vmem>>, vector<16x32xf32>
    %c0_1 = arith.constant 0 : index
    %c0_2 = arith.constant 0 : index
    %1 = vector.load %arg5[%c0_1, %c0_2] : memref<32x8xf32, #tpu.memory_space<vmem>>, vector<32x8xf32>
    %cst = arith.constant dense<0.000000e+00> : vector<16x8xf32>
    %2 = tpu.matmul %0, %1, %cst {dimension_numbers = #tpu.dot_dimension_numbers<[1], [0], [0], [1], [0, 0, 1, 1], [], []>} : vector<16x32xf32>, vector<32x8xf32>, vector<16x8xf32> -> vector<16x8xf32>
    %c0_3 = arith.constant 0 : index
    %c0_4 = arith.constant 0 : index
    %3 = vector.load %arg6[%c0_3, %c0_4] : memref<1x8xf32, #tpu.memory_space<vmem>>, vector<1x8xf32>
    %4 = vector.broadcast %3 : vector<1x8xf32> to vector<16x8xf32>
    %5 = arith.addf %2, %4 : vector<16x8xf32>
    %cst_5 = arith.constant 0.000000e+00 : f32
    %6 = vector.broadcast %cst_5 : f32 to vector<16x8xf32>
    %7 = arith.maximumf %5, %6 : vector<16x8xf32>
    %c0_6 = arith.constant 0 : index
    %c0_7 = arith.constant 0 : index
    %8 = vector.load %arg2[%c0_6, %c0_7] : memref<16x32xf32, #tpu.memory_space<vmem>>, vector<16x32xf32>
    %c0_8 = arith.constant 0 : index
    %c0_9 = arith.constant 0 : index
    %9 = vector.load %arg7[%c0_8, %c0_9] : memref<32x8xf32, #tpu.memory_space<vmem>>, vector<32x8xf32>
    %cst_10 = arith.constant dense<0.000000e+00> : vector<16x8xf32>
    %10 = tpu.matmul %8, %9, %cst_10 {dimension_numbers = #tpu.dot_dimension_numbers<[1], [0], [0], [1], [0, 0, 1, 1], [], []>} : vector<16x32xf32>, vector<32x8xf32>, vector<16x8xf32> -> vector<16x8xf32>
    %c0_11 = arith.constant 0 : index
    %c0_12 = arith.constant 0 : index
    %11 = vector.load %arg8[%c0_11, %c0_12] : memref<1x8xf32, #tpu.memory_space<vmem>>, vector<1x8xf32>
    %12 = vector.broadcast %11 : vector<1x8xf32> to vector<16x8xf32>
    %13 = arith.addf %10, %12 : vector<16x8xf32>
    %cst_13 = arith.constant 0.000000e+00 : f32
    %14 = vector.broadcast %cst_13 : f32 to vector<16x8xf32>
    %15 = arith.maximumf %13, %14 : vector<16x8xf32>
    %c0_14 = arith.constant 0 : index
    %c0_15 = arith.constant 0 : index
    %16 = vector.load %arg3[%c0_14, %c0_15] : memref<16x32xf32, #tpu.memory_space<vmem>>, vector<16x32xf32>
    %c0_16 = arith.constant 0 : index
    %c0_17 = arith.constant 0 : index
    %17 = vector.load %arg9[%c0_16, %c0_17] : memref<32x8xf32, #tpu.memory_space<vmem>>, vector<32x8xf32>
    %cst_18 = arith.constant dense<0.000000e+00> : vector<16x8xf32>
    %18 = tpu.matmul %16, %17, %cst_18 {dimension_numbers = #tpu.dot_dimension_numbers<[1], [0], [0], [1], [0, 0, 1, 1], [], []>} : vector<16x32xf32>, vector<32x8xf32>, vector<16x8xf32> -> vector<16x8xf32>
    %c0_19 = arith.constant 0 : index
    %c0_20 = arith.constant 0 : index
    %19 = vector.load %arg10[%c0_19, %c0_20] : memref<1x8xf32, #tpu.memory_space<vmem>>, vector<1x8xf32>
    %20 = vector.broadcast %19 : vector<1x8xf32> to vector<16x8xf32>
    %21 = arith.addf %18, %20 : vector<16x8xf32>
    %cst_21 = arith.constant 0.000000e+00 : f32
    %22 = vector.broadcast %cst_21 : f32 to vector<16x8xf32>
    %23 = arith.maximumf %21, %22 : vector<16x8xf32>
    %c0_22 = arith.constant 0 : index
    %c0_23 = arith.constant 0 : index
    %24 = vector.load %arg4[%c0_22, %c0_23] : memref<16x32xf32, #tpu.memory_space<vmem>>, vector<16x32xf32>
    %c0_24 = arith.constant 0 : index
    %c0_25 = arith.constant 0 : index
    %25 = vector.load %arg11[%c0_24, %c0_25] : memref<32x8xf32, #tpu.memory_space<vmem>>, vector<32x8xf32>
    %cst_26 = arith.constant dense<0.000000e+00> : vector<16x8xf32>
    %26 = tpu.matmul %24, %25, %cst_26 {dimension_numbers = #tpu.dot_dimension_numbers<[1], [0], [0], [1], [0, 0, 1, 1], [], []>} : vector<16x32xf32>, vector<32x8xf32>, vector<16x8xf32> -> vector<16x8xf32>
    %c0_27 = arith.constant 0 : index
    %c0_28 = arith.constant 0 : index
    %27 = vector.load %arg12[%c0_27, %c0_28] : memref<1x8xf32, #tpu.memory_space<vmem>>, vector<1x8xf32>
    %28 = vector.broadcast %27 : vector<1x8xf32> to vector<16x8xf32>
    %29 = arith.addf %26, %28 : vector<16x8xf32>
    %cst_29 = arith.constant 0.000000e+00 : f32
    %30 = vector.broadcast %cst_29 : f32 to vector<16x8xf32>
    %31 = arith.maximumf %29, %30 : vector<16x8xf32>
    %c0_30 = arith.constant 0 : index
    %c0_31 = arith.constant 0 : index
    %32 = vector.load %arg13[%c0_30, %c0_31] : memref<8x128xf32, #tpu.memory_space<vmem>>, vector<8x128xf32>
    %cst_32 = arith.constant dense<0.000000e+00> : vector<16x128xf32>
    %33 = tpu.matmul %7, %32, %cst_32 {dimension_numbers = #tpu.dot_dimension_numbers<[1], [0], [0], [1], [0, 0, 1, 1], [], []>} : vector<16x8xf32>, vector<8x128xf32>, vector<16x128xf32> -> vector<16x128xf32>
    %c0_33 = arith.constant 0 : index
    %c0_34 = arith.constant 0 : index
    %34 = vector.load %arg14[%c0_33, %c0_34] : memref<8x128xf32, #tpu.memory_space<vmem>>, vector<8x128xf32>
    %cst_35 = arith.constant dense<0.000000e+00> : vector<16x128xf32>
    %35 = tpu.matmul %15, %34, %cst_35 {dimension_numbers = #tpu.dot_dimension_numbers<[1], [0], [0], [1], [0, 0, 1, 1], [], []>} : vector<16x8xf32>, vector<8x128xf32>, vector<16x128xf32> -> vector<16x128xf32>
    %36 = arith.addf %33, %35 : vector<16x128xf32>
    %c0_36 = arith.constant 0 : index
    %c0_37 = arith.constant 0 : index
    %37 = vector.load %arg15[%c0_36, %c0_37] : memref<8x128xf32, #tpu.memory_space<vmem>>, vector<8x128xf32>
    %cst_38 = arith.constant dense<0.000000e+00> : vector<16x128xf32>
    %38 = tpu.matmul %23, %37, %cst_38 {dimension_numbers = #tpu.dot_dimension_numbers<[1], [0], [0], [1], [0, 0, 1, 1], [], []>} : vector<16x8xf32>, vector<8x128xf32>, vector<16x128xf32> -> vector<16x128xf32>
    %39 = arith.addf %36, %38 : vector<16x128xf32>
    %c0_39 = arith.constant 0 : index
    %c0_40 = arith.constant 0 : index
    %40 = vector.load %arg16[%c0_39, %c0_40] : memref<8x128xf32, #tpu.memory_space<vmem>>, vector<8x128xf32>
    %cst_41 = arith.constant dense<0.000000e+00> : vector<16x128xf32>
    %41 = tpu.matmul %31, %40, %cst_41 {dimension_numbers = #tpu.dot_dimension_numbers<[1], [0], [0], [1], [0, 0, 1, 1], [], []>} : vector<16x8xf32>, vector<8x128xf32>, vector<16x128xf32> -> vector<16x128xf32>
    %42 = arith.addf %39, %41 : vector<16x128xf32>
    %c0_42 = arith.constant 0 : index
    %c0_43 = arith.constant 0 : index
    %43 = vector.load %arg17[%c0_42, %c0_43] : memref<1x128xf32, #tpu.memory_space<vmem>>, vector<1x128xf32>
    %44 = vector.broadcast %43 : vector<1x128xf32> to vector<16x128xf32>
    %45 = arith.addf %42, %44 : vector<16x128xf32>
    %cst_44 = arith.constant 0.000000e+00 : f32
    %46 = vector.broadcast %cst_44 : f32 to vector<16x128xf32>
    %47 = arith.maximumf %45, %46 : vector<16x128xf32>
    %c0_45 = arith.constant 0 : index
    %c0_46 = arith.constant 0 : index
    %48 = vector.load %arg18[%c0_45, %c0_46] : memref<8x128xf32, #tpu.memory_space<vmem>>, vector<8x128xf32>
    %cst_47 = arith.constant dense<0.000000e+00> : vector<8x16xf32>
    %49 = tpu.matmul %48, %47, %cst_47 {dimension_numbers = #tpu.dot_dimension_numbers<[1], [1], [0], [0], [0, 0, 1, 0], [], []>} : vector<8x128xf32>, vector<16x128xf32>, vector<8x16xf32> -> vector<8x16xf32>
    %50 = vector.extract_strided_slice %49 {offsets = [0, 0], sizes = [1, 16], strides = [1, 1]} : vector<8x16xf32> to vector<1x16xf32>
    %c0_48 = arith.constant 0 : index
    %c0_49 = arith.constant 0 : index
    %51 = vector.load %arg19[%c0_48, %c0_49] : memref<1x1xf32, #tpu.memory_space<vmem>>, vector<1x1xf32>
    %52 = vector.broadcast %51 : vector<1x1xf32> to vector<1x16xf32>
    %53 = arith.addf %50, %52 : vector<1x16xf32>
    %c0_50 = arith.constant 0 : index
    %c0_51 = arith.constant 0 : index
    %54 = vector.load %arg20[%c0_50, %c0_51] : memref<1x16xf32, #tpu.memory_space<vmem>>, vector<1x16xf32>
    tpu.vector_store %arg20[%c0_50, %c0_51], %53 {strides = array<i32>} : memref<1x16xf32, #tpu.memory_space<vmem>>, vector<1x16xf32>,
    return
  }
  func.func @transform_0(%arg0: i32) -> (i32, i32) {
    %c0_i32 = arith.constant 0 : i32
    %c0_i32_0 = arith.constant 0 : i32
    return %arg0, %c0_i32 : i32, i32
  }
  func.func @transform_1(%arg0: i32) -> (i32, i32) {
    %c0_i32 = arith.constant 0 : i32
    %c0_i32_0 = arith.constant 0 : i32
    return %arg0, %c0_i32 : i32, i32
  }
  func.func @transform_2(%arg0: i32) -> (i32, i32) {
    %c0_i32 = arith.constant 0 : i32
    %c0_i32_0 = arith.constant 0 : i32
    return %arg0, %c0_i32 : i32, i32
  }
  func.func @transform_3(%arg0: i32) -> (i32, i32) {
    %c0_i32 = arith.constant 0 : i32
    %c0_i32_0 = arith.constant 0 : i32
    return %arg0, %c0_i32 : i32, i32
  }
  func.func @transform_4(%arg0: i32) -> (i32, i32) {
    %c0_i32 = arith.constant 0 : i32
    %c0_i32_0 = arith.constant 0 : i32
    %c0_i32_1 = arith.constant 0 : i32
    return %c0_i32, %c0_i32_0 : i32, i32
  }
  func.func @transform_5(%arg0: i32) -> (i32, i32) {
    %c0_i32 = arith.constant 0 : i32
    %c0_i32_0 = arith.constant 0 : i32
    %c0_i32_1 = arith.constant 0 : i32
    return %c0_i32, %c0_i32_0 : i32, i32
  }
  func.func @transform_6(%arg0: i32) -> (i32, i32) {
    %c0_i32 = arith.constant 0 : i32
    %c0_i32_0 = arith.constant 0 : i32
    %c0_i32_1 = arith.constant 0 : i32
    return %c0_i32, %c0_i32_0 : i32, i32
  }
  func.func @transform_7(%arg0: i32) -> (i32, i32) {
    %c0_i32 = arith.constant 0 : i32
    %c0_i32_0 = arith.constant 0 : i32
    %c0_i32_1 = arith.constant 0 : i32
    return %c0_i32, %c0_i32_0 : i32, i32
  }
  func.func @transform_8(%arg0: i32) -> (i32, i32) {
    %c0_i32 = arith.constant 0 : i32
    %c0_i32_0 = arith.constant 0 : i32
    %c0_i32_1 = arith.constant 0 : i32
    return %c0_i32, %c0_i32_0 : i32, i32
  }
  func.func @transform_9(%arg0: i32) -> (i32, i32) {
    %c0_i32 = arith.constant 0 : i32
    %c0_i32_0 = arith.constant 0 : i32
    %c0_i32_1 = arith.constant 0 : i32
    return %c0_i32, %c0_i32_0 : i32, i32
  }
  func.func @transform_10(%arg0: i32) -> (i32, i32) {
    %c0_i32 = arith.constant 0 : i32
    %c0_i32_0 = arith.constant 0 : i32
    %c0_i32_1 = arith.constant 0 : i32
    return %c0_i32, %c0_i32_0 : i32, i32
  }
  func.func @transform_11(%arg0: i32) -> (i32, i32) {
    %c0_i32 = arith.constant 0 : i32
    %c0_i32_0 = arith.constant 0 : i32
    %c0_i32_1 = arith.constant 0 : i32
    return %c0_i32, %c0_i32_0 : i32, i32
  }
  func.func @transform_12(%arg0: i32) -> (i32, i32) {
    %c0_i32 = arith.constant 0 : i32
    %c0_i32_0 = arith.constant 0 : i32
    %c0_i32_1 = arith.constant 0 : i32
    return %c0_i32, %c0_i32_0 : i32, i32
  }
  func.func @transform_13(%arg0: i32) -> (i32, i32) {
    %c0_i32 = arith.constant 0 : i32
    %c0_i32_0 = arith.constant 0 : i32
    %c0_i32_1 = arith.constant 0 : i32
    return %c0_i32, %c0_i32_0 : i32, i32
  }
  func.func @transform_14(%arg0: i32) -> (i32, i32) {
    %c0_i32 = arith.constant 0 : i32
    %c0_i32_0 = arith.constant 0 : i32
    %c0_i32_1 = arith.constant 0 : i32
    return %c0_i32, %c0_i32_0 : i32, i32
  }
  func.func @transform_15(%arg0: i32) -> (i32, i32) {
    %c0_i32 = arith.constant 0 : i32
    %c0_i32_0 = arith.constant 0 : i32
    %c0_i32_1 = arith.constant 0 : i32
    return %c0_i32, %c0_i32_0 : i32, i32
  }
  func.func @transform_16(%arg0: i32) -> (i32, i32) {
    %c0_i32 = arith.constant 0 : i32
    %c0_i32_0 = arith.constant 0 : i32
    %c0_i32_1 = arith.constant 0 : i32
    return %c0_i32, %c0_i32_0 : i32, i32
  }
  func.func @transform_17(%arg0: i32) -> (i32, i32) {
    %c0_i32 = arith.constant 0 : i32
    %c0_i32_0 = arith.constant 0 : i32
    %c0_i32_1 = arith.constant 0 : i32
    return %c0_i32, %c0_i32_0 : i32, i32
  }
  func.func @transform_18(%arg0: i32) -> (i32, i32) {
    %c0_i32 = arith.constant 0 : i32
    %c0_i32_0 = arith.constant 0 : i32
    %c0_i32_1 = arith.constant 0 : i32
    return %c0_i32, %c0_i32_0 : i32, i32
  }
  func.func @transform_19(%arg0: i32) -> (i32, i32) {
    %c0_i32 = arith.constant 0 : i32
    %c0_i32_0 = arith.constant 0 : i32
    return %arg0, %c0_i32 : i32, i32
  }
}

</mosaic_0001>

<bundles_post_ra>
// kernel: tpu_custom_call.1
= control target key start
LH: loop header
LB: loop body
LE: loop exit
PB: predicated region body
PF: predicated region fallthrough
CT: control target
= control target key end

     0   :  { %s1278_s0 = inlined_call_operand.vmem [shape: f32[16,32], index: 0, kind: input, shape index: {}]   ;;  %s1279_s1 = inlined_call_operand.vmem [shape: f32[16,32], index: 1, kind: input, shape index: {}]   ;;  %s1280_s2 = inlined_call_operand.vmem [shape: f32[16,32], index: 2, kind: input, shape index: {}]   ;;  %s1281_s3 = inlined_call_operand.vmem [shape: f32[16,32], index: 3, kind: input, shape index: {}]   ;;  %s1282_s4 = inlined_call_operand.vmem [shape: f32[32,8], index: 4, kind: input, shape index: {}]   ;;  %s1283_s5 = inlined_call_operand.vmem [shape: f32[1,8], index: 5, kind: input, shape index: {}]   ;;  %s1284_s6 = inlined_call_operand.vmem [shape: f32[32,8], index: 6, kind: input, shape index: {}]   ;;  %s1285_s7 = inlined_call_operand.vmem [shape: f32[1,8], index: 7, kind: input, shape index: {}]   ;;  %s1286_s8 = inlined_call_operand.vmem [shape: f32[32,8], index: 8, kind: input, shape index: {}]   ;;  %s1287_s9 = inlined_call_operand.vmem [shape: f32[1,8], index: 9, kind: input, shape index: {}]   ;;  %s1288_s10 = inlined_call_operand.vmem [shape: f32[32,8], index: 10, kind: input, shape index: {}]   ;;  %s1289_s11 = inlined_call_operand.vmem [shape: f32[1,8], index: 11, kind: input, shape index: {}]   ;;  %s1290_s12 = inlined_call_operand.vmem [shape: f32[8,128], index: 12, kind: input, shape index: {}]   ;;  %s1291_s13 = inlined_call_operand.vmem [shape: f32[8,128], index: 13, kind: input, shape index: {}]   ;;  %s1292_s14 = inlined_call_operand.vmem [shape: f32[8,128], index: 14, kind: input, shape index: {}]   ;;  %s1293_s15 = inlined_call_operand.vmem [shape: f32[8,128], index: 15, kind: input, shape index: {}]   ;;  %s1294_s16 = inlined_call_operand.vmem [shape: f32[1,128], index: 16, kind: input, shape index: {}]   ;;  %s1295_s17 = inlined_call_operand.vmem [shape: f32[8,128], index: 17, kind: input, shape index: {}]   ;;  %s1296_s18 = inlined_call_operand.<no memory space> [shape: f32[1,1], index: 18, kind: input, shape index: {}]   ;;  %s1297_s19 = inlined_call_operand.hbm [shape: f32[1,16], index: 19, kind: output, shape index: {}]  }
   0x1   :  { %1302 = sst [smem:[#allocation6_spill]] %s1278_s0  ;;  %v24_v0 = vstv %s1296_s18 }
   0x2   :  { %1303 = sst [smem:[#allocation7_spill]] %s1279_s1  ;;  %25 = vst [vmem:[#allocation2] sm:$0x1] %v24_v0 }
   0x3   :  { %1304 = sst [smem:[#allocation8_spill]] %s1280_s2 }
   0x4   :  { %1305 = sst [smem:[#allocation9_spill]] %s1281_s3 }
   0x5   :  { %v70_v1 = vld [vmem:[%s1282_s4 + $0x18] sm:$0xff]  ;;  %v69_v3 = vld [vmem:[%s1282_s4 + $0x10] sm:$0xff]  ;;  %v68_v5 = vld [vmem:[%s1282_s4 + $0x8] sm:$0xff]  ;;  %s1306_s1 = sld [smem:[#allocation6_spill]]  ;;  %vm78_vm0 = vcmask 261120  }
   0x6   :  { %v167_v2 = vld [vmem:[%s1284_s6 + $0x18] sm:$0xff]  ;;  %952 = vmatprep.subr.mxu0 %v70_v1  ;;  %v166_v4 = vld [vmem:[%s1284_s6 + $0x10] sm:$0xff]  ;;  %v165_v6 = vld [vmem:[%s1284_s6 + $0x8] sm:$0xff]  ;;  %s1307_s23 = sld [smem:[#allocation7_spill]] }
   0x7   :  { %963 = vmatprep.subr.mxu1 %v167_v2  ;;  %953 = vmatpush3.msra.mxu0 %v70_v1  ;;  %v67_v7 = vld [vmem:[%s1282_s4] sm:$0xff]  ;;  %v263_v13 = vld [vmem:[%s1286_s8 + $0x18] sm:$0xff] }
   0x8   :  { %964 = vmatpush3.msra.mxu1 %v167_v2  ;;  %954 = vmatprep.subr.mxu0 %v69_v3  ;;  %v164_v8 = vld [vmem:[%s1284_s6] sm:$0xff]  ;;  %v359_v14 = vld [vmem:[%s1288_s10 + $0x18] sm:$0xff] }
   0x9   :  { %965 = vmatprep.subr.mxu1 %v166_v4  ;;  %955 = vmatpush3.msra.mxu0 %v69_v3 }
   0xa   :  { %966 = vmatpush3.msra.mxu1 %v166_v4  ;;  %956 = vmatprep.subr.mxu0 %v68_v5 }
   0xb   :  { %967 = vmatprep.subr.mxu1 %v165_v6  ;;  %v65_v9 = vld [vmem:[%s1306_s1] sm:$0xff]  ;;  %957 = vmatpush3.msra.mxu0 %v68_v5  ;;  %v66_v11 = vld [vmem:[%s1306_s1 + $0x8] sm:$0xff] }
   0xc   :  { %968 = vmatpush3.msra.mxu1 %v165_v6  ;;  %v162_v10 = vld [vmem:[%s1307_s23] sm:$0xff]  ;;  %958 = vmatprep.subr.mxu0 %v67_v7  ;;  %v163_v12 = vld [vmem:[%s1307_s23 + $0x8] sm:$0xff] }
   0xd   :  { %969 = vmatprep.subr.mxu1 %v164_v8  ;;  %959 = vmatpush3.msra.mxu0 %v67_v7 }
   0xe   :  { %960 = vmatprep.mubr.msk.f32.mxu0 %vm78_vm0, %v65_v9 }
   0xf   :  { %26 = vsyncpa [#allocation4], 0  ;;  %970 = vmatpush3.msra.mxu1 %v164_v8  ;;  %971 = vmatprep.mubr.msk.f32.mxu1 %vm78_vm0, %v162_v10  ;;  %v262_v15 = vld [vmem:[%s1286_s8 + $0x10] sm:$0xff]  ;;  %v261_v17 = vld [vmem:[%s1286_s8 + $0x8] sm:$0xff]  ;;  %s1308_s18 = sld [smem:[#allocation8_spill]]  ;;  %vm452_vm1 = vcmask 64512  }
  0x10   :  { %961 = vmatmul.mubr.msk.f32.vlgmr.msra.gmra.mxu0 %vm78_vm0, %v66_v11  ;;  %972 = vmatmul.mubr.msk.f32.vlgmr.msra.gmra.mxu1 %vm78_vm0, %v163_v12  ;;  %v358_v16 = vld [vmem:[%s1288_s10 + $0x10] sm:$0xff]  ;;  %v357_v18 = vld [vmem:[%s1288_s10 + $0x8] sm:$0xff]  ;;  %v260_v19 = vld [vmem:[%s1286_s8] sm:$0xff]  ;;  %s1309_s27 = sld [smem:[#allocation9_spill]]  ;;  %v1050_v57 = vmov 0.0   ;;  %vm1051_vm2 = vmmov 0  }
  0x11   :  { %974 = vmatprep.subr.mxu0 %v263_v13  ;;  %985 = vmatprep.subr.mxu1 %v359_v14  ;;  %v356_v20 = vld [vmem:[%s1288_s10] sm:$0xff]  ;;  %v1052_v59 = vmov 0   ;;  %vm876_vm3 = vcmask 122880  }
  0x12   :  { %975 = vmatpush3.msra.mxu0 %v263_v13  ;;  %986 = vmatpush3.msra.mxu1 %v359_v14  ;;  %v451_v25 = vld [vmem:[%s1291_s13] sm:$0xff] }
  0x13   :  { %976 = vmatprep.subr.mxu0 %v262_v15  ;;  %987 = vmatprep.subr.mxu1 %v358_v16  ;;  %v450_v26 = vld [vmem:[%s1290_s12] sm:$0xff] }
  0x14   :  { %977 = vmatpush3.msra.mxu0 %v262_v15  ;;  %988 = vmatpush3.msra.mxu1 %v358_v16  ;;  %v615_v27 = vld [vmem:[%s1292_s14] sm:$0xff]  ;;  %v871_v16 = vlaneseq }
  0x15   :  { %978 = vmatprep.subr.mxu0 %v261_v17  ;;  %989 = vmatprep.subr.mxu1 %v357_v18  ;;  %v258_v21 = vld [vmem:[%s1308_s18] sm:$0xff]  ;;  %v259_v23 = vld [vmem:[%s1308_s18 + $0x8] sm:$0xff] }
  0x16   :  { %979 = vmatpush3.msra.mxu0 %v261_v17  ;;  %990 = vmatpush3.msra.mxu1 %v357_v18  ;;  %v354_v22 = vld [vmem:[%s1309_s27] sm:$0xff]  ;;  %v355_v24 = vld [vmem:[%s1309_s27 + $0x8] sm:$0xff]  ;;  %v872_v17 = vshrl.u32 %v871_v16, 7 }
  0x17   :  { %980 = vmatprep.subr.mxu0 %v260_v19  ;;  %991 = vmatprep.subr.mxu1 %v356_v20  ;;  %v895_v28 = vld [vmem:[%s1285_s7] ss:$0 sm:$0xff] }
  0x18   :  { %981 = vmatpush3.msra.mxu0 %v260_v19  ;;  %982 = vmatprep.mubr.msk.f32.mxu0 %vm78_vm0, %v258_v21  ;;  %v892_v30 = vld [vmem:[%s1283_s5] ss:$0 sm:$0xff]  ;;  %v873_v18 = vsub.s32 0, %v872_v17 }
  0x19   :  { %992 = vmatpush3.msra.mxu1 %v356_v20  ;;  %993 = vmatprep.mubr.msk.f32.mxu1 %vm78_vm0, %v354_v22  ;;  %v699_v41 = vld [vmem:[%s1293_s15] sm:$0xff] }
  0x1a   :  { %983 = vmatmul.mubr.msk.f32.vlgmr.msra.gmra.mxu0 %vm78_vm0, %v259_v23  ;;  %994 = vmatmul.mubr.msk.f32.vlgmr.msra.gmra.mxu1 %vm78_vm0, %v355_v24  ;;  %v901_v42 = vld [vmem:[%s1289_s11] ss:$0 sm:$0xff] }
  0x1b   :  { %996 = vmatprep.subr.mxu1 %v451_v25  ;;  %1006 = vmatprep.subr.mxu0 %v615_v27  ;;  %v898_v43 = vld [vmem:[%s1287_s9] ss:$0 sm:$0xff] }
  0x1c   :  { %997 = vmatpush3.msra.mxu1 %v451_v25  ;;  %1007 = vmatpush3.msra.mxu0 %v615_v27  ;;  %v865_v58 = vld [vmem:[#allocation2] sm:$0x1] }
  0x1d   :  { %1001 = vmatprep.subr.mxu1 %v450_v26  ;;  %1016 = vmatprep.subr.mxu0 %v1050_v57  ;;  %v912_v5 = vld [vmem:[%s1294_s16] ss:$0 sm:$0xff]  ;;  %s1053_s16 = smov [#allocation3]  }
  0x1e   :  { %1027 = vset.pattern.permute.xlu0 %v1052_v59  ;;  %v794_v15 = vld [vmem:[%s1295_s17] sm:$0xff]  ;;  %s884_s18 = sshll.u32 %s1053_s16, 4  ;;  %s885_s18 = int_to_ptr.vmem [resolvable:$true] %s884_s18 }
  0x1f   :  { %868 = vperm.xlu0 %1027, %v865_v58   ;;  %s1028_s3 = scalar_lea.vmem %s885_s18, 16  ;;  %s1032_s26 = scalar_lea.vmem %s885_s18, 32 }
  0x20   :  { %p1029_p0 = scmp.ne.s32.totalorder %s885_s18, %s1028_s3  ;;  %p1033_p1 = scmp.lt.s32.totalorder %s885_s18, %s885_s18 }
  0x21   :  { %p1034_p2 = scmp.lt.s32.totalorder %s1032_s26, %s1028_s3 }
  0x23   :  { %p1035_p3 = por %p1034_p2, %p1033_p1 }
  0x25   :  { %p1036_p4 = pnand %p1035_p3, %p1029_p0 }
  0x9a   :  { %v869_v19 = vpop.permute.xlu0 %868 }
  0x9b   :  { %v874_v20 = vrot.slane %v869_v19, %v873_v18 }
  0xd0   :  { %v962_v29 = vpop.f32.mrf.mxu0  ;;  %v973_v31 = vpop.f32.mrf.mxu1 }
  0xd1   :  { %v253_v32 = vadd.f32 %v973_v31, %v895_v28  ;;  %v157_v39 = vadd.f32 %v962_v29, %v892_v30 }
  0xd2   :  { %v151_v33 = vpop.f32.mrf.mxu0  ;;  %v247_v34 = vpop.f32.mrf.mxu1 }
  0xd3   :  { %v152_v35 = vadd.f32 %v892_v30, %v151_v33  ;;  %v248_v36 = vadd.f32 %v895_v28, %v247_v34  ;;  %v257_v37 = vmax.f32 %v253_v32, 0.0  ;;  %v161_v44 = vmax.f32 %v157_v39, 0.0 }
  0xd5   :  { %v256_v38 = vmax.f32 %v248_v36, 0.0  ;;  %v160_v40 = vmax.f32 %v152_v35, 0.0 }
  0xd7   :  { %998 = vmatprep.mubr.msk.f32.mxu1 %vm452_vm1, %v256_v38 }
  0xd8   :  { %999 = vmatmul.mubr.msk.f32.vlgmr.msra.gmra.mxu1 %vm452_vm1, %v257_v37 }
  0xd9   :  { %1003 = vmatprep.mubr.msk.f32.mxu1 %vm452_vm1, %v160_v40  ;;  %1002 = vmatpush3.msra.mxu1 %v450_v26 }
  0xda   :  { %v984_v45 = vpop.f32.mrf.mxu0  ;;  %v995_v46 = vpop.f32.mrf.mxu1  ;;  %1011 = vmatprep.subr.mxu1 %v699_v41 }
  0xdb   :  { %v445_v47 = vadd.f32 %v995_v46, %v901_v42  ;;  %v349_v48 = vadd.f32 %v984_v45, %v898_v43 }
  0xdc   :  { %v343_v49 = vpop.f32.mrf.mxu0  ;;  %v439_v50 = vpop.f32.mrf.mxu1  ;;  %1004 = vmatmul.mubr.msk.f32.vlgmr.msra.gmra.mxu1 %vm452_vm1, %v161_v44 }
  0xdd   :  { %v344_v51 = vadd.f32 %v898_v43, %v343_v49  ;;  %v440_v52 = vadd.f32 %v901_v42, %v439_v50  ;;  %1012 = vmatpush3.msra.mxu1 %v699_v41  ;;  %v449_v53 = vmax.f32 %v445_v47, 0.0  ;;  %v353_v56 = vmax.f32 %v349_v48, 0.0 }
  0xdf   :  { %v352_v54 = vmax.f32 %v344_v51, 0.0  ;;  %v448_v55 = vmax.f32 %v440_v52, 0.0 }
  0xe1   :  { %1008 = vmatprep.mubr.msk.f32.mxu0 %vm452_vm1, %v352_v54  ;;  %1013 = vmatprep.mubr.msk.f32.mxu1 %vm452_vm1, %v448_v55 }
  0xe2   :  { %1009 = vmatmul.mubr.msk.f32.vlgmr.msra.gmra.mxu0 %vm452_vm1, %v353_v56  ;;  %1014 = vmatmul.mubr.msk.f32.vlgmr.msra.gmra.mxu1 %vm452_vm1, %v449_v53 }
  0xe3   :  { %1020 = vmatprep.mubr.msk.f32.mxu0 %vm1051_vm2, %v1050_v57 }
 0x198   :  { %v1000_v60 = vpop.f32.mrf.mxu1 }
 0x19a   :  { %v525_v61 = vpop.f32.mrf.mxu1 }
 0x19c   :  { %v1005_v62 = vpop.f32.mrf.mxu1 }
 0x19d   :  { %v612_v0 = vadd.f32 %v1005_v62, %v1000_v60 }
 0x19e   :  { %v606_v63 = vpop.f32.mrf.mxu1 }
 0x19f   :  { %v607_v3 = vadd.f32 %v606_v63, %v525_v61 }
 0x1a2   :  { %v1010_v1 = vpop.f32.mrf.mxu0  ;;  %v1015_v2 = vpop.f32.mrf.mxu1 }
 0x1a3   :  { %v698_v4 = vadd.f32 %v1010_v1, %v612_v0 }
 0x1a4   :  { %v688_v6 = vpop.f32.mrf.mxu0  ;;  %v772_v9 = vpop.f32.mrf.mxu1 }
 0x1a5   :  { %v782_v7 = vadd.f32 %v1015_v2, %v698_v4  ;;  %v697_v8 = vadd.f32 %v688_v6, %v607_v3 }
 0x1a7   :  { %v791_v10 = vadd.f32 %v912_v5, %v782_v7  ;;  %v781_v11 = vadd.f32 %v772_v9, %v697_v8 }
 0x1a9   :  { %v793_v12 = vmax.f32 %v791_v10, 0.0  ;;  %v790_v13 = vadd.f32 %v912_v5, %v781_v11 }
 0x1ab   :  { %1017 = vmatpush3.xpose.msra.mxu0 %v793_v12  ;;  %v792_v14 = vmax.f32 %v790_v13, 0.0 }
 0x1ac   :  { %1018 = vmatprep.subr.mxu0 %v1050_v57 }
 0x1af   :  { %1019 = vmatpush3.xpose.msra.mxu0 %v792_v14 }
 0x1b2   :  { %1021 = vmatmul.mubr.f32.vlgmr.msra.gmra.mxu0 %v794_v15 }
 0x272   :  { %v861_v21 = vpop.f32.mrf.mxu0 }
 0x273   :  { %v875_v22 = vadd.f32 %v874_v20, %v861_v21 }
 0x274   :  { %v1022_v23 = vpop.f32.mrf.mxu0 }
 0x275   :  { %877 = vst.msk [vmem:[#allocation3] sm:$0x1] %vm876_vm3, %v875_v22 }
 0x276   :  { %1039 = shalt.err (!%p1036_p4)
}
 0x277   :  { %887 = dma.vmem_to_hbm [thread:$0]  %s885_s18, 16, %s1297_s19, [#allocation4]  }
 0x278   :  { %1048 = dma.done.wait [#allocation4], 16  }
 0x279   :  { %1049 = vsyncadd [#allocation4], 4294967280 }
 0x27a   :  { %891 = vsyncpa [#allocation4], 1 }

</bundles_post_ra>
